<compile_context>
chip_gen: v7x
topology: tpu7x:2x2x1
jax: 0.10.0
libtpu: 0.0.40
codegen_flags: <defaults>
</compile_context>

<pallas_src>
import functools

import jax
import jax.numpy as jnp
from jax.experimental import pallas as pl
from jax.experimental.pallas import tpu as pltpu


_ACTIVATIONS = {
    "relu": lambda v: jnp.maximum(v, 0.0),
    # PyTorch F.gelu defaults to the exact erf form.
    "gelu": functools.partial(jax.nn.gelu, approximate=False),
    "tanh": jnp.tanh,
    "sigmoid": jax.nn.sigmoid,
}


def _round_up(a, b):
    return ((a + b - 1) // b) * b


def _make_kernel(act_fn):
    def kernel(x_ref, wt_ref, b_ref, o_ref):
        # x_ref  : [TILE_M, LANE_W]   (VMEM, pipelined over the grid)
        # wt_ref : [LANE_W, LANE_W]   (VMEM, resident: constant block index)
        # b_ref  : [1, LANE_W]        (VMEM, resident)
        x = x_ref[...]
        h = jnp.dot(x, wt_ref[...], preferred_element_type=jnp.float32) + b_ref[...]
        o_ref[...] = (act_fn(h) + x.astype(jnp.float32)).astype(o_ref.dtype)

    return kernel


def mlp_simple_shortcut(x, weight, bias, activation="relu", *, tile_m_max=8192):
    """x: [..., width]; weight: [width, width] (PyTorch layout: out, in); bias: [width]."""
    act_fn = _ACTIVATIONS[activation]
    orig_shape = x.shape
    width = x.shape[-1]
    m = 1
    for d in x.shape[:-1]:
        m *= d
    x2d = x.reshape(m, width)

    wt = weight.T.astype(x.dtype)          # (in, out): kernel computes x @ Wt
    b = bias.astype(x.dtype)

    # ---- Lane-dense packing: fill all 128 lanes with `pack` width-groups ----
    if width < 128 and 128 % width == 0:
        pack = 128 // width
    else:
        pack = 1
    lane_w = pack * width

    # Only pad needed anywhere: <= pack-1 rows so the pack reshape is legal.
    m_pack = _round_up(m, pack)
    if m_pack != m:
        x2d = jnp.pad(x2d, ((0, m_pack - m), (0, 0)))
    xp = x2d.reshape(m_pack // pack, lane_w)   # contiguous reshape: free
    mp = m_pack // pack

    if pack > 1:
        # Block-diagonal weight: each width-lane group gets its own independent Wt.
        w_in = jnp.kron(jnp.eye(pack, dtype=wt.dtype), wt)          # [lane_w, lane_w]
        b_in = jnp.tile(b, pack).reshape(1, lane_w)
    else:
        w_in = wt
        b_in = b.reshape(1, lane_w)

    # ---- M tiling: fat tiles, but keep >=~4 grid steps when M is small ------
    itemsize = jnp.dtype(x.dtype).itemsize
    sub = {4: 8, 2: 16, 1: 32}.get(itemsize, 8)
    tile_m = max(sub, min(tile_m_max, _round_up(pl.cdiv(mp, 4), sub)))
    grid = (pl.cdiv(mp, tile_m),)   # ragged last block: Pallas masks OOB rows

    # Explicit VMEM budget: double-buffered x tile + out tile, plus params.
    tile_bytes = tile_m * lane_w * itemsize
    param_bytes = (lane_w * lane_w + lane_w) * itemsize
    vmem_limit = 2 * 2 * tile_bytes + 2 * param_bytes + (2 << 20)
    vmem_limit = max(16 << 20, min(vmem_limit, 48 << 20))  # headroom on v7x 64 MiB

    # TODO(synk): input_output_aliases={0: 0} would save the output HBM alloc
    # when the caller donates x (footprint only, not bandwidth); omitted for safety.
    out = pl.pallas_call(
        _make_kernel(act_fn),
        out_shape=jax.ShapeDtypeStruct((mp, lane_w), x.dtype),
        grid_spec=pltpu.PrefetchScalarGridSpec(
            num_scalar_prefetch=0,
            grid=grid,
            in_specs=[
                pl.BlockSpec((tile_m, lane_w), lambda i: (i, 0)),   # x: pipelined
                pl.BlockSpec((lane_w, lane_w), lambda i: (0, 0)),   # W: VMEM-resident
                pl.BlockSpec((1, lane_w), lambda i: (0, 0)),        # b: VMEM-resident
            ],
            out_specs=pl.BlockSpec((tile_m, lane_w), lambda i: (i, 0)),
        ),
        compiler_params=pltpu.CompilerParams(
            # Row-wise, embarrassingly parallel: shard across v7x's 2 TCs.
            dimension_semantics=("parallel",),
            vmem_limit_bytes=vmem_limit,
        ),
    )(xp, w_in, b_in)

    out = out.reshape(m_pack, width)
    if m_pack != m:
        out = out[:m]
    return out.reshape(orig_shape)


if __name__ == "__main__":
    # Module config: width=32, activation='relu'
    width = 32
    batch, seq = 2, 8

    key = jax.random.PRNGKey(0)
    kx, kw, kb = jax.random.split(key, 3)

    # Deterministic parameter init matching nn.init.normal_(std=0.1)
    kernel_init_std = 0.1
    bias_init_std = 0.1
    weight = kernel_init_std * jax.random.normal(kw, (width, width), dtype=jnp.float32)  # (out, in)
    bias = bias_init_std * jax.random.normal(kb, (width,), dtype=jnp.float32)

    x = jax.random.normal(kx, (batch, seq, width), dtype=jnp.float32)

    out = mlp_simple_shortcut(x, weight, bias, activation="relu")
    out = jax.block_until_ready(out)

    # Reference check in plain JAX
    ref = jnp.maximum(jnp.einsum("bsw,ow->bso", x, weight) + bias, 0.0) + x
    assert out.shape == x.shape
    assert jnp.allclose(out, ref, atol=1e-5, rtol=1e-5), "mismatch vs reference"

    # Larger, ragged shape: multi-step grid + ragged last block (no pad/slice).
    x_big = jax.random.normal(jax.random.PRNGKey(1), (3, 700, width), dtype=jnp.float32)
    out_big = jax.block_until_ready(mlp_simple_shortcut(x_big, weight, bias))
    ref_big = jnp.maximum(jnp.einsum("bsw,ow->bso", x_big, weight) + bias, 0.0) + x_big
    assert out_big.shape == x_big.shape
    assert jnp.allclose(out_big, ref_big, atol=1e-5, rtol=1e-5), "mismatch vs reference (big)"

    # Ragged-pack shape (m % pack != 0) to cover the <=pack-1 row pad path.
    x_odd = jax.random.normal(jax.random.PRNGKey(2), (5, 13, width), dtype=jnp.float32)
    out_odd = jax.block_until_ready(mlp_simple_shortcut(x_odd, weight, bias))
    ref_odd = jnp.maximum(jnp.einsum("bsw,ow->bso", x_odd, weight) + bias, 0.0) + x_odd
    assert jnp.allclose(out_odd, ref_odd, atol=1e-5, rtol=1e-5), "mismatch vs reference (odd)"

    print("KERNEL_OK")
</pallas_src>

<mosaic_0001>
module attributes {stable_mosaic.version = 11 : i64} {
  func.func @kernel(%arg0: i32, %arg1: memref<8x128xf32, #tpu.memory_space<vmem>>, %arg2: memref<128x128xf32, #tpu.memory_space<vmem>>, %arg3: memref<1x128xf32, #tpu.memory_space<vmem>>, %arg4: memref<8x128xf32, #tpu.memory_space<vmem>>) attributes {dimension_semantics = [#tpu.dimension_semantics<parallel>], iteration_bounds = array<i64: 1>, scalar_prefetch = 0 : i64, scratch_operands = 0 : i64, tpu.core_type = #tpu.core_type<tc>, window_params = [{transform_indices = @transform_0, window_bounds = array<i64: 8, 128>}, {pipeline_mode = #tpu.pipeline_mode<synchronous>, transform_indices = @transform_1, window_bounds = array<i64: 128, 128>}, {pipeline_mode = #tpu.pipeline_mode<synchronous>, transform_indices = @transform_2, window_bounds = array<i64: 1, 128>}, {transform_indices = @transform_3, window_bounds = array<i64: 8, 128>}]} {
    %c0 = arith.constant 0 : index
    %c0_0 = arith.constant 0 : index
    %0 = vector.load %arg1[%c0, %c0_0] : memref<8x128xf32, #tpu.memory_space<vmem>>, vector<8x128xf32>
    %c0_1 = arith.constant 0 : index
    %c0_2 = arith.constant 0 : index
    %1 = vector.load %arg2[%c0_1, %c0_2] : memref<128x128xf32, #tpu.memory_space<vmem>>, vector<128x128xf32>
    %cst = arith.constant dense<0.000000e+00> : vector<8x128xf32>
    %2 = tpu.matmul %0, %1, %cst {dimension_numbers = #tpu.dot_dimension_numbers<[1], [0], [0], [1], [0, 0, 1, 1], [], []>} : vector<8x128xf32>, vector<128x128xf32>, vector<8x128xf32> -> vector<8x128xf32>
    %c0_3 = arith.constant 0 : index
    %c0_4 = arith.constant 0 : index
    %3 = vector.load %arg3[%c0_3, %c0_4] : memref<1x128xf32, #tpu.memory_space<vmem>>, vector<1x128xf32>
    %4 = vector.broadcast %3 : vector<1x128xf32> to vector<8x128xf32>
    %5 = arith.addf %2, %4 : vector<8x128xf32>
    %cst_5 = arith.constant 0.000000e+00 : f32
    %6 = vector.broadcast %cst_5 : f32 to vector<8x128xf32>
    %7 = arith.maximumf %5, %6 : vector<8x128xf32>
    %8 = arith.addf %7, %0 : vector<8x128xf32>
    %c0_6 = arith.constant 0 : index
    %c0_7 = arith.constant 0 : index
    %9 = vector.load %arg4[%c0_6, %c0_7] : memref<8x128xf32, #tpu.memory_space<vmem>>, vector<8x128xf32>
    tpu.vector_store %arg4[%c0_6, %c0_7], %8 {strides = array<i32>} : memref<8x128xf32, #tpu.memory_space<vmem>>, vector<8x128xf32>,
    return
  }
  func.func @transform_0(%arg0: i32) -> (i32, i32) {
    %c0_i32 = arith.constant 0 : i32
    %c0_i32_0 = arith.constant 0 : i32
    return %arg0, %c0_i32 : i32, i32
  }
  func.func @transform_1(%arg0: i32) -> (i32, i32) {
    %c0_i32 = arith.constant 0 : i32
    %c0_i32_0 = arith.constant 0 : i32
    %c0_i32_1 = arith.constant 0 : i32
    return %c0_i32, %c0_i32_0 : i32, i32
  }
  func.func @transform_2(%arg0: i32) -> (i32, i32) {
    %c0_i32 = arith.constant 0 : i32
    %c0_i32_0 = arith.constant 0 : i32
    %c0_i32_1 = arith.constant 0 : i32
    return %c0_i32, %c0_i32_0 : i32, i32
  }
  func.func @transform_3(%arg0: i32) -> (i32, i32) {
    %c0_i32 = arith.constant 0 : i32
    %c0_i32_0 = arith.constant 0 : i32
    return %arg0, %c0_i32 : i32, i32
  }
}

</mosaic_0001>

<bundles_post_ra>
// kernel: tpu_custom_call.1
= control target key start
LH: loop header
LB: loop body
LE: loop exit
PB: predicated region body
PF: predicated region fallthrough
CT: control target
= control target key end

     0   :  { %8 = vsyncpa [#allocation3], 0  ;;  %s392_s0 = inlined_call_operand.hbm [shape: f32[4,128], index: 0, kind: input, shape index: {}]   ;;  %s393_s1 = inlined_call_operand.hbm [shape: f32[128,128], index: 1, kind: input, shape index: {}]   ;;  %s394_s2 = inlined_call_operand.vmem [shape: f32[1,128], index: 2, kind: input, shape index: {}]   ;;  %s395_s3 = inlined_call_operand.hbm [shape: f32[4,128], index: 3, kind: output, shape index: {}]  }
   0x1   :  { %9 = vsyncpa [#allocation6], 0 }
   0x2   :  { %10 = vsyncpa [#allocation4], 0 }
   0x3   :  { %15 = vsyncadd [#allocation3], 64  ;;  %s317_s12 = smov [#allocation2]   ;;  %s245_s16 = scalar_lea.hbm %s392_s0, 64 }
   0x4   :  { %s16_s13 = sshll.u32 %s317_s12, 4  ;;  %p246_p0 = scmp.ne.s32.totalorder %s392_s0, %s245_s16  ;;  %s17_s13 = int_to_ptr.vmem [resolvable:$true] %s16_s13 }
   0x5   :  { %p249_p1 = scmp.lt.u32.totalorder %s245_s16, %s392_s0 }
   0x7   :  { %p251_p2 = pnand %p249_p1, %p246_p0 }
   0x9   :  { %254 = shalt.err (!%p251_p2)
}
   0xa   :  { %s255_s21 = scalar_lea.vmem %s17_s13, 64  ;;  %s259_s22 = scalar_lea.vmem %s17_s13, 128 }
   0xb   :  { %p256_p3 = scmp.ne.s32.totalorder %s17_s13, %s255_s21  ;;  %p260_p4 = scmp.lt.s32.totalorder %s17_s13, %s17_s13 }
   0xc   :  { %p261_p5 = scmp.lt.s32.totalorder %s259_s22, %s255_s21 }
   0xe   :  { %p262_p6 = por %p261_p5, %p260_p4 }
  0x10   :  { %p263_p7 = pnand %p262_p6, %p256_p3 }
  0x12   :  { %266 = shalt.err (!%p263_p7)
}
  0x13   :  { %s318_s23 = smov 64   ;;  %s319_s24 = smov 4  }
  0x14   :  { %22 = dma.hbm_to_vmem [thread:$0]  %s392_s0, 64, %s17_s13, [#allocation3], %s318_s23, %s318_s23, %s319_s24  }
  0x15   :  { %s320_s27 = smov [#allocation5]   ;;  %s267_s4 = scalar_lea.hbm %s393_s1, 2048 }
  0x16   :  { %s28_s28 = sshll.u32 %s320_s27, 4  ;;  %p268_p8 = scmp.ne.s32.totalorder %s393_s1, %s267_s4  ;;  %s29_s28 = int_to_ptr.vmem [resolvable:$true] %s28_s28 }
  0x17   :  { %p271_p9 = scmp.lt.u32.totalorder %s267_s4, %s393_s1 }
  0x19   :  { %p273_p10 = pnand %p271_p9, %p268_p8 }
  0x1b   :  { %276 = shalt.err (!%p273_p10)
}
  0x1c   :  { %s277_s9 = scalar_lea.vmem %s29_s28, 2048  ;;  %p282_p12 = scmp.lt.s32.totalorder %s29_s28, %s29_s28 }
  0x1d   :  { %p278_p11 = scmp.ne.s32.totalorder %s29_s28, %s277_s9  ;;  %p283_p13 = scmp.lt.s32.totalorder %s277_s9, %s277_s9 }
  0x1f   :  { %p284_p0 = por %p283_p13, %p282_p12 }
  0x21   :  { %p285_p1 = pnand %p284_p0, %p278_p11 }
  0x23   :  { %288 = shalt.err (!%p285_p1)
}
  0x24   :  { %s321_s0 = smov 128   ;;  %s322_s10 = smov 8  }
  0x25   :  { %34 = dma.hbm_to_vmem [thread:$0]  %s393_s1, 2048, %s29_s28, [#allocation6], %s321_s0, %s321_s0, %s322_s10  }
  0x26   :  { %311 = dma.done.wait [#allocation3], 128  }
  0x27   :  { %312 = vsyncadd [#allocation3], 4294967168 }
  0x28   :  { %313 = dma.done.wait [#allocation6], 2048  }
  0x29   :  { %314 = vsyncadd [#allocation6], 4294965248  ;;  %v323_v0 = vmov 0.0|0.0   ;;  %vm324_vm0 = vmmov 0   ;;  %v325_v1 = vmov 0.0   ;;  %v44_v2 = vld [vmem:[#allocation5] sm:$0xff] }
  0x2a   :  { %211 = vmatprep.subr.bf16.mxu0 %v323_v0  ;;  %208 = vmatprep.mubr.msk.f32.mxu0 %vm324_vm0, %v325_v1  ;;  %v45_v3 = vld [vmem:[#allocation5 + $0x8] sm:$0xff]  ;;  %v46_v4 = vld [vmem:[#allocation5 + $0x10] sm:$0xff]  ;;  %v47_v6 = vld [vmem:[#allocation5 + $0x18] sm:$0xff] }
  0x2b   :  { %v212_v5 = vpack.c.bf16 %v45_v3, %v44_v2  ;;  %v215_v7 = vpack.c.bf16 %v47_v6, %v46_v4  ;;  %v48_v8 = vld [vmem:[#allocation5 + $0x20] sm:$0xff]  ;;  %v49_v9 = vld [vmem:[#allocation5 + $0x28] sm:$0xff]  ;;  %v50_v11 = vld [vmem:[#allocation5 + $0x30] sm:$0xff] }
  0x2c   :  { %v218_v10 = vpack.c.bf16 %v49_v9, %v48_v8  ;;  %v51_v12 = vld [vmem:[#allocation5 + $0x38] sm:$0xff]  ;;  %v52_v14 = vld [vmem:[#allocation5 + $0x40] sm:$0xff]  ;;  %v53_v15 = vld [vmem:[#allocation5 + $0x48] sm:$0xff] }
  0x2d   :  { %213 = vmatpush3.bf16.msra.mxu0 %v212_v5  ;;  %v221_v13 = vpack.c.bf16 %v51_v12, %v50_v11  ;;  %v224_v16 = vpack.c.bf16 %v53_v15, %v52_v14  ;;  %v54_v17 = vld [vmem:[#allocation5 + $0x50] sm:$0xff]  ;;  %v55_v18 = vld [vmem:[#allocation5 + $0x58] sm:$0xff]  ;;  %v56_v20 = vld [vmem:[#allocation5 + $0x60] sm:$0xff] }
  0x2e   :  { %214 = vmatprep.subr.bf16.mxu0 %v323_v0  ;;  %v227_v19 = vpack.c.bf16 %v55_v18, %v54_v17  ;;  %v57_v21 = vld [vmem:[#allocation5 + $0x68] sm:$0xff]  ;;  %v58_v23 = vld [vmem:[#allocation5 + $0x70] sm:$0xff]  ;;  %v59_v24 = vld [vmem:[#allocation5 + $0x78] sm:$0xff] }
  0x2f   :  { %v230_v22 = vpack.c.bf16 %v57_v21, %v56_v20  ;;  %v233_v25 = vpack.c.bf16 %v59_v24, %v58_v23  ;;  %v43_v26 = vld [vmem:[#allocation2] sm:$0xff] }
  0x30   :  { %v158_v27 = vld [vmem:[%s394_s2] ss:$0 sm:$0xff] }
  0x31   :  { %216 = vmatpush3.bf16.msra.mxu0 %v215_v7 }
  0x32   :  { %217 = vmatprep.subr.bf16.mxu0 %v323_v0 }
  0x35   :  { %219 = vmatpush3.bf16.msra.mxu0 %v218_v10 }
  0x36   :  { %220 = vmatprep.subr.bf16.mxu0 %v323_v0 }
  0x39   :  { %222 = vmatpush3.bf16.msra.mxu0 %v221_v13 }
  0x3a   :  { %223 = vmatprep.subr.bf16.mxu0 %v323_v0 }
  0x3d   :  { %225 = vmatpush3.bf16.msra.mxu0 %v224_v16 }
  0x3e   :  { %226 = vmatprep.subr.bf16.mxu0 %v323_v0 }
  0x41   :  { %228 = vmatpush3.bf16.msra.mxu0 %v227_v19 }
  0x42   :  { %229 = vmatprep.subr.bf16.mxu0 %v323_v0 }
  0x45   :  { %231 = vmatpush3.bf16.msra.mxu0 %v230_v22 }
  0x46   :  { %232 = vmatprep.subr.bf16.mxu0 %v323_v0 }
  0x49   :  { %234 = vmatpush3.bf16.msra.mxu0 %v233_v25 }
  0x4c   :  { %209 = vmatmul.mubr.f32.vlgmr.msra.gmra.mrb[0].mxu0 %v43_v26 }
 0x11f   :  { %v133_v28 = vpop.f32.mrb[0].mxu0 }
 0x120   :  { %v134_v29 = vadd.f32 %v158_v27, %v133_v28  ;;  %v210_v30 = vpop.f32.mrb[1].mxu0 }
 0x122   :  { %v137_v31 = vmax.f32 %v134_v29, 0.0 }
 0x124   :  { %v138_v32 = vadd.f32 %v137_v31, %v43_v26 }
 0x126   :  { %139 = vst [vmem:[#allocation7] sm:$0xff] %v138_v32 }
 0x127   :  { %144 = vsyncadd [#allocation4], 64  ;;  %s326_s14 = smov [#allocation7]  }
 0x128   :  { %s145_s15 = sshll.u32 %s326_s14, 4  ;;  %s146_s15 = int_to_ptr.vmem [resolvable:$true] %s145_s15 }
 0x129   :  { %s289_s16 = scalar_lea.vmem %s146_s15, 64  ;;  %s293_s17 = scalar_lea.vmem %s146_s15, 128 }
 0x12a   :  { %p290_p2 = scmp.ne.s32.totalorder %s146_s15, %s289_s16  ;;  %p294_p3 = scmp.lt.s32.totalorder %s146_s15, %s146_s15 }
 0x12b   :  { %p295_p4 = scmp.lt.s32.totalorder %s293_s17, %s289_s16 }
 0x12d   :  { %p296_p5 = por %p295_p4, %p294_p3 }
 0x12f   :  { %p297_p6 = pnand %p296_p5, %p290_p2 }
 0x131   :  { %300 = shalt.err (!%p297_p6)
}
 0x132   :  { %s301_s19 = scalar_lea.hbm %s395_s3, 64 }
 0x133   :  { %p302_p7 = scmp.ne.s32.totalorder %s395_s3, %s301_s19  ;;  %p305_p8 = scmp.lt.u32.totalorder %s301_s19, %s395_s3 }
 0x135   :  { %p307_p9 = pnand %p305_p8, %p302_p7 }
 0x137   :  { %310 = shalt.err (!%p307_p9)
}
 0x138   :  { %151 = dma.vmem_to_hbm [thread:$0]  %s146_s15, 64, %s395_s3, [#allocation4], %s318_s23, %s318_s23, %s319_s24  }
 0x139   :  { %315 = dma.done.wait [#allocation4], 128  }
 0x13a   :  { %316 = vsyncadd [#allocation4], 4294967168 }
 0x13b   :  { %155 = vsyncpa [#allocation3], 1 }
 0x13c   :  { %156 = vsyncpa [#allocation6], 1 }
 0x13d   :  { %157 = vsyncpa [#allocation4], 1 }

</bundles_post_ra>
